<compile_context>
chip_gen: v7x
topology: tpu7x:2x2x1
jax: 0.10.0
libtpu: 0.0.40
codegen_flags: <defaults>
</compile_context>

<pallas_src>
import jax
import jax.numpy as jnp
from jax import lax
from jax.experimental import pallas as pl
from jax.experimental.pallas import tpu as pltpu


def _make_fused_kernel(wss, poolings, B, D, F, L):
    """Depthwise-grouped conv1d for every window size + all poolings, fused."""
    P = len(poolings)
    W = len(wss)
    # roll+mask tap shifts only when the lane axis is vreg-aligned (Mosaic rotate
    # alignment rules); for sub-vreg L the static prefix windows live inside one vreg.
    use_roll = (L % 128 == 0)

    def kernel(x_ref, *refs):
        # refs = w_ref_0, b_ref_0, ..., w_ref_{W-1}, b_ref_{W-1}, o_ref
        o_ref = refs[-1]
        x = x_ref[...].astype(jnp.float32)                     # (B, D, L)

        if use_roll:
            lane = lax.broadcasted_iota(jnp.int32, (B, D, L), 2)

        for wi, ws in enumerate(wss):
            w = refs[2 * wi][...].astype(jnp.float32)          # (F, D, ws)
            b = refs[2 * wi + 1][...].astype(jnp.float32)      # (F, D)
            out_len = L - ws + 1
            inv_len = 1.0 / float(out_len)

            # Tap views of x, hoisted out of the f loop (shared by all F filters).
            if use_roll:
                xs = [x if k == 0 else pltpu.roll(x, shift=(L - k) % L, axis=-1)
                      for k in range(ws)]
                valid = lane < out_len                          # (B, D, L)
            else:
                xs = [x[:, :, k:k + out_len] for k in range(ws)]

            for f in range(F):
                w_f = w[f:f + 1]                                # (1, D, ws)
                b_f = b[f:f + 1, :]                             # (1, D)

                # Depthwise conv for filter f, bias hoisted out of the accumulator:
                #   acc[b, d, t] = sum_k x[b, d, t+k] * w[d, f, k]
                acc = xs[0] * w_f[:, :, 0:1]                    # (B, D, width)
                for k in range(1, ws):                          # ws static -> unrolled
                    acc = acc + xs[k] * w_f[:, :, k:k + 1]

                if use_roll:
                    acc_max = jnp.where(valid, acc, -jnp.inf)
                    acc_min = jnp.where(valid, acc, jnp.inf)
                    acc_sum = jnp.where(valid, acc, 0.0)
                else:
                    acc_max = acc_min = acc_sum = acc

                for pi, p in enumerate(poolings):
                    if p == 'max':
                        pooled = jnp.max(acc_max, axis=-1) + b_f
                    elif p == 'min':
                        # MyMinPool1d: max(-(acc+b)) = -min(acc) - b (no re-negation).
                        pooled = -jnp.min(acc_min, axis=-1) - b_f
                    elif p == 'mean':
                        pooled = jnp.sum(acc_sum, axis=-1) * inv_len + b_f
                    else:
                        raise ValueError(p)
                    # Direct slab store (no lane concats): leading index (pi, wi, f).
                    o_ref[(pi * W + wi) * F + f] = pooled.astype(o_ref.dtype)

    return kernel


def block_b_forward(x, weights, biases, wss, poolings):
    """Full BlockB forward.  x: (B, D, L); weights[i]: (D, F, ws_i); biases[i]: (D, F).
    Returns (B, P, W, D, F)."""
    B, D, L = x.shape
    F = weights[0].shape[1]
    P, W = len(poolings), len(wss)

    kernel = _make_fused_kernel(tuple(wss), tuple(poolings), B, D, F, L)

    # Wrapper-side layout prep (free XLA ops):
    #   weights -> (F, D, ws): each tap w_f[:, :, k:k+1] is a per-sublane scalar
    #   broadcast along lanes against the (B, D, width) accumulator.
    #   biases  -> (F, D): per-lane add onto the pooled (B, D) slabs.
    flat_params = []
    for w, b in zip(weights, biases):
        flat_params.append(jnp.transpose(w, (1, 0, 2)).astype(jnp.float32))   # (F, D, ws)
        flat_params.append(jnp.transpose(b, (1, 0)).astype(jnp.float32))      # (F, D)

    n_in = 1 + len(flat_params)
    out_flat = pl.pallas_call(
        kernel,
        out_shape=jax.ShapeDtypeStruct((P * W * F, B, D), jnp.float32),
        in_specs=[pl.BlockSpec(memory_space=pltpu.MemorySpace.VMEM)
                  for _ in range(n_in)],
        out_specs=pl.BlockSpec(memory_space=pltpu.MemorySpace.VMEM),
    )(x, *flat_params)

    # (P*W*F, B, D) -> (P, W, F, B, D) -> (B, P, W, D, F): tiny wrapper transpose.
    return jnp.transpose(out_flat.reshape(P, W, F, B, D), (3, 0, 1, 4, 2))


def block_b_reference(x, weights, biases, wss, poolings):
    """Pure-JAX reference mirroring the PyTorch module exactly."""
    B, D, L = x.shape
    results = []
    for p in poolings:
        per_ws = []
        for w, b, ws in zip(weights, biases, wss):
            out_len = L - ws + 1
            conv = jnp.zeros((B, D, w.shape[1], out_len), jnp.float32)
            for k in range(ws):
                conv = conv + x[:, :, None, k:k + out_len] * w[None, :, :, k][..., None]
            conv = conv + b[None, :, :, None]
            if p == 'max':
                pooled = conv.max(-1)
            elif p == 'min':
                pooled = (-conv).max(-1)     # MyMinPool1d: max(-x), no re-negation
            else:  # mean
                pooled = conv.mean(-1)
            per_ws.append(pooled)
        results.append(jnp.stack(per_ws, axis=1))    # (B, W, D, F)
    return jnp.stack(results, axis=1)                # (B, P, W, D, F)


if __name__ == "__main__":
    # Module hyperparameters (small, deterministic).
    wss = [2, 3]
    poolings = ['max', 'min', 'mean']
    word_vector_dim = 4       # D
    filter_number = 3         # F
    B, L = 2, 16

    key = jax.random.PRNGKey(0)
    key, kx = jax.random.split(key)
    x = jax.random.normal(kx, (B, word_vector_dim, L), dtype=jnp.float32)

    weights, biases = [], []
    for ws in wss:
        key, kw, kb = jax.random.split(key, 3)
        # torch Conv1d(groups=D) weight is (D*F, 1, ws); stored here as (D, F, ws)
        # with out-channel index d*F + f (same semantics).
        fan_in = 1 * ws
        bound = 1.0 / (fan_in ** 0.5)
        w = jax.random.uniform(kw, (word_vector_dim, filter_number, ws),
                               minval=-bound, maxval=bound, dtype=jnp.float32)
        b = jax.random.uniform(kb, (word_vector_dim, filter_number),
                               minval=-bound, maxval=bound, dtype=jnp.float32)
        weights.append(w)
        biases.append(b)

    out = block_b_forward(x, weights, biases, wss, poolings)
    out = jax.block_until_ready(out)

    ref = block_b_reference(x, weights, biases, wss, poolings)
    assert out.shape == (B, len(poolings), len(wss), word_vector_dim, filter_number)
    assert jnp.allclose(out, ref, atol=1e-5, rtol=1e-5), "mismatch vs reference"

    print("KERNEL_OK")
</pallas_src>

<mosaic_0001>
module attributes {stable_mosaic.version = 11 : i64} {
  func.func @kernel(%arg0: memref<2x4x16xf32, #tpu.memory_space<vmem>>, %arg1: memref<3x4x2xf32, #tpu.memory_space<vmem>>, %arg2: memref<3x4xf32, #tpu.memory_space<vmem>>, %arg3: memref<3x4x3xf32, #tpu.memory_space<vmem>>, %arg4: memref<3x4xf32, #tpu.memory_space<vmem>>, %arg5: memref<18x2x4xf32, #tpu.memory_space<vmem>>) attributes {dimension_semantics = [], scalar_prefetch = 0 : i64, scratch_operands = 0 : i64, tpu.core_type = #tpu.core_type<tc>} {
    %c0 = arith.constant 0 : index
    %c0_0 = arith.constant 0 : index
    %c0_1 = arith.constant 0 : index
    %0 = vector.load %arg0[%c0, %c0_0, %c0_1] : memref<2x4x16xf32, #tpu.memory_space<vmem>>, vector<2x4x16xf32>
    %c0_2 = arith.constant 0 : index
    %c0_3 = arith.constant 0 : index
    %c0_4 = arith.constant 0 : index
    %1 = vector.load %arg1[%c0_2, %c0_3, %c0_4] : memref<3x4x2xf32, #tpu.memory_space<vmem>>, vector<3x4x2xf32>
    %c0_5 = arith.constant 0 : index
    %c0_6 = arith.constant 0 : index
    %2 = vector.load %arg2[%c0_5, %c0_6] : memref<3x4xf32, #tpu.memory_space<vmem>>, vector<3x4xf32>
    %3 = vector.extract_strided_slice %0 {offsets = [0, 0, 0], sizes = [2, 4, 15], strides = [1, 1, 1]} : vector<2x4x16xf32> to vector<2x4x15xf32>
    %4 = vector.extract_strided_slice %0 {offsets = [0, 0, 1], sizes = [2, 4, 15], strides = [1, 1, 1]} : vector<2x4x16xf32> to vector<2x4x15xf32>
    %5 = vector.extract_strided_slice %1 {offsets = [0, 0, 0], sizes = [1, 4, 2], strides = [1, 1, 1]} : vector<3x4x2xf32> to vector<1x4x2xf32>
    %6 = vector.extract_strided_slice %2 {offsets = [0, 0], sizes = [1, 4], strides = [1, 1]} : vector<3x4xf32> to vector<1x4xf32>
    %7 = vector.extract_strided_slice %5 {offsets = [0, 0, 0], sizes = [1, 4, 1], strides = [1, 1, 1]} : vector<1x4x2xf32> to vector<1x4x1xf32>
    %8 = vector.broadcast %7 : vector<1x4x1xf32> to vector<2x4x15xf32>
    %9 = arith.mulf %3, %8 : vector<2x4x15xf32>
    %10 = vector.extract_strided_slice %5 {offsets = [0, 0, 1], sizes = [1, 4, 1], strides = [1, 1, 1]} : vector<1x4x2xf32> to vector<1x4x1xf32>
    %11 = vector.broadcast %10 : vector<1x4x1xf32> to vector<2x4x15xf32>
    %12 = arith.mulf %4, %11 : vector<2x4x15xf32>
    %13 = arith.addf %9, %12 : vector<2x4x15xf32>
    %cst = arith.constant dense<0xFF800000> : vector<2x4xf32>
    %14 = vector.multi_reduction <maximumf>, %13, %cst [2] : vector<2x4x15xf32> to vector<2x4xf32>
    %15 = vector.broadcast %6 : vector<1x4xf32> to vector<2x4xf32>
    %16 = arith.addf %14, %15 : vector<2x4xf32>
    %c0_7 = arith.constant 0 : index
    %c0_8 = arith.constant 0 : index
    %c0_9 = arith.constant 0 : index
    %17 = vector.load %arg5[%c0_7, %c0_8, %c0_9] : memref<18x2x4xf32, #tpu.memory_space<vmem>>, vector<1x2x4xf32>
    %18 = vector.shape_cast %17 : vector<1x2x4xf32> to vector<2x4xf32>
    %19 = vector.shape_cast %16 : vector<2x4xf32> to vector<1x2x4xf32>
    tpu.vector_store %arg5[%c0_7, %c0_8, %c0_9], %19 {strides = array<i32>} : memref<18x2x4xf32, #tpu.memory_space<vmem>>, vector<1x2x4xf32>,
    %cst_10 = arith.constant dense<0x7F800000> : vector<2x4xf32>
    %20 = vector.multi_reduction <minimumf>, %13, %cst_10 [2] : vector<2x4x15xf32> to vector<2x4xf32>
    %cst_11 = arith.constant 0.000000e+00 : f32
    %21 = vector.broadcast %cst_11 : f32 to vector<2x4xf32>
    %22 = arith.subf %21, %20 : vector<2x4xf32>
    %23 = vector.broadcast %6 : vector<1x4xf32> to vector<2x4xf32>
    %24 = arith.subf %22, %23 : vector<2x4xf32>
    %c6 = arith.constant 6 : index
    %c0_12 = arith.constant 0 : index
    %c0_13 = arith.constant 0 : index
    %25 = vector.load %arg5[%c6, %c0_12, %c0_13] : memref<18x2x4xf32, #tpu.memory_space<vmem>>, vector<1x2x4xf32>
    %26 = vector.shape_cast %25 : vector<1x2x4xf32> to vector<2x4xf32>
    %27 = vector.shape_cast %24 : vector<2x4xf32> to vector<1x2x4xf32>
    tpu.vector_store %arg5[%c6, %c0_12, %c0_13], %27 {strides = array<i32>} : memref<18x2x4xf32, #tpu.memory_space<vmem>>, vector<1x2x4xf32>,
    %cst_14 = arith.constant dense<0.000000e+00> : vector<2x4xf32>
    %28 = vector.multi_reduction <add>, %13, %cst_14 [2] : vector<2x4x15xf32> to vector<2x4xf32>
    %cst_15 = arith.constant 0.0666666701 : f32
    %29 = vector.broadcast %cst_15 : f32 to vector<2x4xf32>
    %30 = arith.mulf %28, %29 : vector<2x4xf32>
    %31 = vector.broadcast %6 : vector<1x4xf32> to vector<2x4xf32>
    %32 = arith.addf %30, %31 : vector<2x4xf32>
    %c12 = arith.constant 12 : index
    %c0_16 = arith.constant 0 : index
    %c0_17 = arith.constant 0 : index
    %33 = vector.load %arg5[%c12, %c0_16, %c0_17] : memref<18x2x4xf32, #tpu.memory_space<vmem>>, vector<1x2x4xf32>
    %34 = vector.shape_cast %33 : vector<1x2x4xf32> to vector<2x4xf32>
    %35 = vector.shape_cast %32 : vector<2x4xf32> to vector<1x2x4xf32>
    tpu.vector_store %arg5[%c12, %c0_16, %c0_17], %35 {strides = array<i32>} : memref<18x2x4xf32, #tpu.memory_space<vmem>>, vector<1x2x4xf32>,
    %36 = vector.extract_strided_slice %1 {offsets = [1, 0, 0], sizes = [1, 4, 2], strides = [1, 1, 1]} : vector<3x4x2xf32> to vector<1x4x2xf32>
    %37 = vector.extract_strided_slice %2 {offsets = [1, 0], sizes = [1, 4], strides = [1, 1]} : vector<3x4xf32> to vector<1x4xf32>
    %38 = vector.extract_strided_slice %36 {offsets = [0, 0, 0], sizes = [1, 4, 1], strides = [1, 1, 1]} : vector<1x4x2xf32> to vector<1x4x1xf32>
    %39 = vector.broadcast %38 : vector<1x4x1xf32> to vector<2x4x15xf32>
    %40 = arith.mulf %3, %39 : vector<2x4x15xf32>
    %41 = vector.extract_strided_slice %36 {offsets = [0, 0, 1], sizes = [1, 4, 1], strides = [1, 1, 1]} : vector<1x4x2xf32> to vector<1x4x1xf32>
    %42 = vector.broadcast %41 : vector<1x4x1xf32> to vector<2x4x15xf32>
    %43 = arith.mulf %4, %42 : vector<2x4x15xf32>
    %44 = arith.addf %40, %43 : vector<2x4x15xf32>
    %cst_18 = arith.constant dense<0xFF800000> : vector<2x4xf32>
    %45 = vector.multi_reduction <maximumf>, %44, %cst_18 [2] : vector<2x4x15xf32> to vector<2x4xf32>
    %46 = vector.broadcast %37 : vector<1x4xf32> to vector<2x4xf32>
    %47 = arith.addf %45, %46 : vector<2x4xf32>
    %c1 = arith.constant 1 : index
    %c0_19 = arith.constant 0 : index
    %c0_20 = arith.constant 0 : index
    %48 = vector.load %arg5[%c1, %c0_19, %c0_20] : memref<18x2x4xf32, #tpu.memory_space<vmem>>, vector<1x2x4xf32>
    %49 = vector.shape_cast %48 : vector<1x2x4xf32> to vector<2x4xf32>
    %50 = vector.shape_cast %47 : vector<2x4xf32> to vector<1x2x4xf32>
    tpu.vector_store %arg5[%c1, %c0_19, %c0_20], %50 {strides = array<i32>} : memref<18x2x4xf32, #tpu.memory_space<vmem>>, vector<1x2x4xf32>,
    %cst_21 = arith.constant dense<0x7F800000> : vector<2x4xf32>
    %51 = vector.multi_reduction <minimumf>, %44, %cst_21 [2] : vector<2x4x15xf32> to vector<2x4xf32>
    %cst_22 = arith.constant 0.000000e+00 : f32
    %52 = vector.broadcast %cst_22 : f32 to vector<2x4xf32>
    %53 = arith.subf %52, %51 : vector<2x4xf32>
    %54 = vector.broadcast %37 : vector<1x4xf32> to vector<2x4xf32>
    %55 = arith.subf %53, %54 : vector<2x4xf32>
    %c7 = arith.constant 7 : index
    %c0_23 = arith.constant 0 : index
    %c0_24 = arith.constant 0 : index
    %56 = vector.load %arg5[%c7, %c0_23, %c0_24] : memref<18x2x4xf32, #tpu.memory_space<vmem>>, vector<1x2x4xf32>
    %57 = vector.shape_cast %56 : vector<1x2x4xf32> to vector<2x4xf32>
    %58 = vector.shape_cast %55 : vector<2x4xf32> to vector<1x2x4xf32>
    tpu.vector_store %arg5[%c7, %c0_23, %c0_24], %58 {strides = array<i32>} : memref<18x2x4xf32, #tpu.memory_space<vmem>>, vector<1x2x4xf32>,
    %cst_25 = arith.constant dense<0.000000e+00> : vector<2x4xf32>
    %59 = vector.multi_reduction <add>, %44, %cst_25 [2] : vector<2x4x15xf32> to vector<2x4xf32>
    %cst_26 = arith.constant 0.0666666701 : f32
    %60 = vector.broadcast %cst_26 : f32 to vector<2x4xf32>
    %61 = arith.mulf %59, %60 : vector<2x4xf32>
    %62 = vector.broadcast %37 : vector<1x4xf32> to vector<2x4xf32>
    %63 = arith.addf %61, %62 : vector<2x4xf32>
    %c13 = arith.constant 13 : index
    %c0_27 = arith.constant 0 : index
    %c0_28 = arith.constant 0 : index
    %64 = vector.load %arg5[%c13, %c0_27, %c0_28] : memref<18x2x4xf32, #tpu.memory_space<vmem>>, vector<1x2x4xf32>
    %65 = vector.shape_cast %64 : vector<1x2x4xf32> to vector<2x4xf32>
    %66 = vector.shape_cast %63 : vector<2x4xf32> to vector<1x2x4xf32>
    tpu.vector_store %arg5[%c13, %c0_27, %c0_28], %66 {strides = array<i32>} : memref<18x2x4xf32, #tpu.memory_space<vmem>>, vector<1x2x4xf32>,
    %67 = vector.extract_strided_slice %1 {offsets = [2, 0, 0], sizes = [1, 4, 2], strides = [1, 1, 1]} : vector<3x4x2xf32> to vector<1x4x2xf32>
    %68 = vector.extract_strided_slice %2 {offsets = [2, 0], sizes = [1, 4], strides = [1, 1]} : vector<3x4xf32> to vector<1x4xf32>
    %69 = vector.extract_strided_slice %67 {offsets = [0, 0, 0], sizes = [1, 4, 1], strides = [1, 1, 1]} : vector<1x4x2xf32> to vector<1x4x1xf32>
    %70 = vector.broadcast %69 : vector<1x4x1xf32> to vector<2x4x15xf32>
    %71 = arith.mulf %3, %70 : vector<2x4x15xf32>
    %72 = vector.extract_strided_slice %67 {offsets = [0, 0, 1], sizes = [1, 4, 1], strides = [1, 1, 1]} : vector<1x4x2xf32> to vector<1x4x1xf32>
    %73 = vector.broadcast %72 : vector<1x4x1xf32> to vector<2x4x15xf32>
    %74 = arith.mulf %4, %73 : vector<2x4x15xf32>
    %75 = arith.addf %71, %74 : vector<2x4x15xf32>
    %cst_29 = arith.constant dense<0xFF800000> : vector<2x4xf32>
    %76 = vector.multi_reduction <maximumf>, %75, %cst_29 [2] : vector<2x4x15xf32> to vector<2x4xf32>
    %77 = vector.broadcast %68 : vector<1x4xf32> to vector<2x4xf32>
    %78 = arith.addf %76, %77 : vector<2x4xf32>
    %c2 = arith.constant 2 : index
    %c0_30 = arith.constant 0 : index
    %c0_31 = arith.constant 0 : index
    %79 = vector.load %arg5[%c2, %c0_30, %c0_31] : memref<18x2x4xf32, #tpu.memory_space<vmem>>, vector<1x2x4xf32>
    %80 = vector.shape_cast %79 : vector<1x2x4xf32> to vector<2x4xf32>
    %81 = vector.shape_cast %78 : vector<2x4xf32> to vector<1x2x4xf32>
    tpu.vector_store %arg5[%c2, %c0_30, %c0_31], %81 {strides = array<i32>} : memref<18x2x4xf32, #tpu.memory_space<vmem>>, vector<1x2x4xf32>,
    %cst_32 = arith.constant dense<0x7F800000> : vector<2x4xf32>
    %82 = vector.multi_reduction <minimumf>, %75, %cst_32 [2] : vector<2x4x15xf32> to vector<2x4xf32>
    %cst_33 = arith.constant 0.000000e+00 : f32
    %83 = vector.broadcast %cst_33 : f32 to vector<2x4xf32>
    %84 = arith.subf %83, %82 : vector<2x4xf32>
    %85 = vector.broadcast %68 : vector<1x4xf32> to vector<2x4xf32>
    %86 = arith.subf %84, %85 : vector<2x4xf32>
    %c8 = arith.constant 8 : index
    %c0_34 = arith.constant 0 : index
    %c0_35 = arith.constant 0 : index
    %87 = vector.load %arg5[%c8, %c0_34, %c0_35] : memref<18x2x4xf32, #tpu.memory_space<vmem>>, vector<1x2x4xf32>
    %88 = vector.shape_cast %87 : vector<1x2x4xf32> to vector<2x4xf32>
    %89 = vector.shape_cast %86 : vector<2x4xf32> to vector<1x2x4xf32>
    tpu.vector_store %arg5[%c8, %c0_34, %c0_35], %89 {strides = array<i32>} : memref<18x2x4xf32, #tpu.memory_space<vmem>>, vector<1x2x4xf32>,
    %cst_36 = arith.constant dense<0.000000e+00> : vector<2x4xf32>
    %90 = vector.multi_reduction <add>, %75, %cst_36 [2] : vector<2x4x15xf32> to vector<2x4xf32>
    %cst_37 = arith.constant 0.0666666701 : f32
    %91 = vector.broadcast %cst_37 : f32 to vector<2x4xf32>
    %92 = arith.mulf %90, %91 : vector<2x4xf32>
    %93 = vector.broadcast %68 : vector<1x4xf32> to vector<2x4xf32>
    %94 = arith.addf %92, %93 : vector<2x4xf32>
    %c14 = arith.constant 14 : index
    %c0_38 = arith.constant 0 : index
    %c0_39 = arith.constant 0 : index
    %95 = vector.load %arg5[%c14, %c0_38, %c0_39] : memref<18x2x4xf32, #tpu.memory_space<vmem>>, vector<1x2x4xf32>
    %96 = vector.shape_cast %95 : vector<1x2x4xf32> to vector<2x4xf32>
    %97 = vector.shape_cast %94 : vector<2x4xf32> to vector<1x2x4xf32>
    tpu.vector_store %arg5[%c14, %c0_38, %c0_39], %97 {strides = array<i32>} : memref<18x2x4xf32, #tpu.memory_space<vmem>>, vector<1x2x4xf32>,
    %c0_40 = arith.constant 0 : index
    %c0_41 = arith.constant 0 : index
    %c0_42 = arith.constant 0 : index
    %98 = vector.load %arg3[%c0_40, %c0_41, %c0_42] : memref<3x4x3xf32, #tpu.memory_space<vmem>>, vector<3x4x3xf32>
    %c0_43 = arith.constant 0 : index
    %c0_44 = arith.constant 0 : index
    %99 = vector.load %arg4[%c0_43, %c0_44] : memref<3x4xf32, #tpu.memory_space<vmem>>, vector<3x4xf32>
    %100 = vector.extract_strided_slice %0 {offsets = [0, 0, 0], sizes = [2, 4, 14], strides = [1, 1, 1]} : vector<2x4x16xf32> to vector<2x4x14xf32>
    %101 = vector.extract_strided_slice %0 {offsets = [0, 0, 1], sizes = [2, 4, 14], strides = [1, 1, 1]} : vector<2x4x16xf32> to vector<2x4x14xf32>
    %102 = vector.extract_strided_slice %0 {offsets = [0, 0, 2], sizes = [2, 4, 14], strides = [1, 1, 1]} : vector<2x4x16xf32> to vector<2x4x14xf32>
    %103 = vector.extract_strided_slice %98 {offsets = [0, 0, 0], sizes = [1, 4, 3], strides = [1, 1, 1]} : vector<3x4x3xf32> to vector<1x4x3xf32>
    %104 = vector.extract_strided_slice %99 {offsets = [0, 0], sizes = [1, 4], strides = [1, 1]} : vector<3x4xf32> to vector<1x4xf32>
    %105 = vector.extract_strided_slice %103 {offsets = [0, 0, 0], sizes = [1, 4, 1], strides = [1, 1, 1]} : vector<1x4x3xf32> to vector<1x4x1xf32>
    %106 = vector.broadcast %105 : vector<1x4x1xf32> to vector<2x4x14xf32>
    %107 = arith.mulf %100, %106 : vector<2x4x14xf32>
    %108 = vector.extract_strided_slice %103 {offsets = [0, 0, 1], sizes = [1, 4, 1], strides = [1, 1, 1]} : vector<1x4x3xf32> to vector<1x4x1xf32>
    %109 = vector.broadcast %108 : vector<1x4x1xf32> to vector<2x4x14xf32>
    %110 = arith.mulf %101, %109 : vector<2x4x14xf32>
    %111 = arith.addf %107, %110 : vector<2x4x14xf32>
    %112 = vector.extract_strided_slice %103 {offsets = [0, 0, 2], sizes = [1, 4, 1], strides = [1, 1, 1]} : vector<1x4x3xf32> to vector<1x4x1xf32>
    %113 = vector.broadcast %112 : vector<1x4x1xf32> to vector<2x4x14xf32>
    %114 = arith.mulf %102, %113 : vector<2x4x14xf32>
    %115 = arith.addf %111, %114 : vector<2x4x14xf32>
    %cst_45 = arith.constant dense<0xFF800000> : vector<2x4xf32>
    %116 = vector.multi_reduction <maximumf>, %115, %cst_45 [2] : vector<2x4x14xf32> to vector<2x4xf32>
    %117 = vector.broadcast %104 : vector<1x4xf32> to vector<2x4xf32>
    %118 = arith.addf %116, %117 : vector<2x4xf32>
    %c3 = arith.constant 3 : index
    %c0_46 = arith.constant 0 : index
    %c0_47 = arith.constant 0 : index
    %119 = vector.load %arg5[%c3, %c0_46, %c0_47] : memref<18x2x4xf32, #tpu.memory_space<vmem>>, vector<1x2x4xf32>
    %120 = vector.shape_cast %119 : vector<1x2x4xf32> to vector<2x4xf32>
    %121 = vector.shape_cast %118 : vector<2x4xf32> to vector<1x2x4xf32>
    tpu.vector_store %arg5[%c3, %c0_46, %c0_47], %121 {strides = array<i32>} : memref<18x2x4xf32, #tpu.memory_space<vmem>>, vector<1x2x4xf32>,
    %cst_48 = arith.constant dense<0x7F800000> : vector<2x4xf32>
    %122 = vector.multi_reduction <minimumf>, %115, %cst_48 [2] : vector<2x4x14xf32> to vector<2x4xf32>
    %cst_49 = arith.constant 0.000000e+00 : f32
    %123 = vector.broadcast %cst_49 : f32 to vector<2x4xf32>
    %124 = arith.subf %123, %122 : vector<2x4xf32>
    %125 = vector.broadcast %104 : vector<1x4xf32> to vector<2x4xf32>
    %126 = arith.subf %124, %125 : vector<2x4xf32>
    %c9 = arith.constant 9 : index
    %c0_50 = arith.constant 0 : index
    %c0_51 = arith.constant 0 : index
    %127 = vector.load %arg5[%c9, %c0_50, %c0_51] : memref<18x2x4xf32, #tpu.memory_space<vmem>>, vector<1x2x4xf32>
    %128 = vector.shape_cast %127 : vector<1x2x4xf32> to vector<2x4xf32>
    %129 = vector.shape_cast %126 : vector<2x4xf32> to vector<1x2x4xf32>
    tpu.vector_store %arg5[%c9, %c0_50, %c0_51], %129 {strides = array<i32>} : memref<18x2x4xf32, #tpu.memory_space<vmem>>, vector<1x2x4xf32>,
    %cst_52 = arith.constant dense<0.000000e+00> : vector<2x4xf32>
    %130 = vector.multi_reduction <add>, %115, %cst_52 [2] : vector<2x4x14xf32> to vector<2x4xf32>
    %cst_53 = arith.constant 0.0714285746 : f32
    %131 = vector.broadcast %cst_53 : f32 to vector<2x4xf32>
    %132 = arith.mulf %130, %131 : vector<2x4xf32>
    %133 = vector.broadcast %104 : vector<1x4xf32> to vector<2x4xf32>
    %134 = arith.addf %132, %133 : vector<2x4xf32>
    %c15 = arith.constant 15 : index
    %c0_54 = arith.constant 0 : index
    %c0_55 = arith.constant 0 : index
    %135 = vector.load %arg5[%c15, %c0_54, %c0_55] : memref<18x2x4xf32, #tpu.memory_space<vmem>>, vector<1x2x4xf32>
    %136 = vector.shape_cast %135 : vector<1x2x4xf32> to vector<2x4xf32>
    %137 = vector.shape_cast %134 : vector<2x4xf32> to vector<1x2x4xf32>
    tpu.vector_store %arg5[%c15, %c0_54, %c0_55], %137 {strides = array<i32>} : memref<18x2x4xf32, #tpu.memory_space<vmem>>, vector<1x2x4xf32>,
    %138 = vector.extract_strided_slice %98 {offsets = [1, 0, 0], sizes = [1, 4, 3], strides = [1, 1, 1]} : vector<3x4x3xf32> to vector<1x4x3xf32>
    %139 = vector.extract_strided_slice %99 {offsets = [1, 0], sizes = [1, 4], strides = [1, 1]} : vector<3x4xf32> to vector<1x4xf32>
    %140 = vector.extract_strided_slice %138 {offsets = [0, 0, 0], sizes = [1, 4, 1], strides = [1, 1, 1]} : vector<1x4x3xf32> to vector<1x4x1xf32>
    %141 = vector.broadcast %140 : vector<1x4x1xf32> to vector<2x4x14xf32>
    %142 = arith.mulf %100, %141 : vector<2x4x14xf32>
    %143 = vector.extract_strided_slice %138 {offsets = [0, 0, 1], sizes = [1, 4, 1], strides = [1, 1, 1]} : vector<1x4x3xf32> to vector<1x4x1xf32>
    %144 = vector.broadcast %143 : vector<1x4x1xf32> to vector<2x4x14xf32>
    %145 = arith.mulf %101, %144 : vector<2x4x14xf32>
    %146 = arith.addf %142, %145 : vector<2x4x14xf32>
    %147 = vector.extract_strided_slice %138 {offsets = [0, 0, 2], sizes = [1, 4, 1], strides = [1, 1, 1]} : vector<1x4x3xf32> to vector<1x4x1xf32>
    %148 = vector.broadcast %147 : vector<1x4x1xf32> to vector<2x4x14xf32>
    %149 = arith.mulf %102, %148 : vector<2x4x14xf32>
    %150 = arith.addf %146, %149 : vector<2x4x14xf32>
    %cst_56 = arith.constant dense<0xFF800000> : vector<2x4xf32>
    %151 = vector.multi_reduction <maximumf>, %150, %cst_56 [2] : vector<2x4x14xf32> to vector<2x4xf32>
    %152 = vector.broadcast %139 : vector<1x4xf32> to vector<2x4xf32>
    %153 = arith.addf %151, %152 : vector<2x4xf32>
    %c4 = arith.constant 4 : index
    %c0_57 = arith.constant 0 : index
    %c0_58 = arith.constant 0 : index
    %154 = vector.load %arg5[%c4, %c0_57, %c0_58] : memref<18x2x4xf32, #tpu.memory_space<vmem>>, vector<1x2x4xf32>
    %155 = vector.shape_cast %154 : vector<1x2x4xf32> to vector<2x4xf32>
    %156 = vector.shape_cast %153 : vector<2x4xf32> to vector<1x2x4xf32>
    tpu.vector_store %arg5[%c4, %c0_57, %c0_58], %156 {strides = array<i32>} : memref<18x2x4xf32, #tpu.memory_space<vmem>>, vector<1x2x4xf32>,
    %cst_59 = arith.constant dense<0x7F800000> : vector<2x4xf32>
    %157 = vector.multi_reduction <minimumf>, %150, %cst_59 [2] : vector<2x4x14xf32> to vector<2x4xf32>
    %cst_60 = arith.constant 0.000000e+00 : f32
    %158 = vector.broadcast %cst_60 : f32 to vector<2x4xf32>
    %159 = arith.subf %158, %157 : vector<2x4xf32>
    %160 = vector.broadcast %139 : vector<1x4xf32> to vector<2x4xf32>
    %161 = arith.subf %159, %160 : vector<2x4xf32>
    %c10 = arith.constant 10 : index
    %c0_61 = arith.constant 0 : index
    %c0_62 = arith.constant 0 : index
    %162 = vector.load %arg5[%c10, %c0_61, %c0_62] : memref<18x2x4xf32, #tpu.memory_space<vmem>>, vector<1x2x4xf32>
    %163 = vector.shape_cast %162 : vector<1x2x4xf32> to vector<2x4xf32>
    %164 = vector.shape_cast %161 : vector<2x4xf32> to vector<1x2x4xf32>
    tpu.vector_store %arg5[%c10, %c0_61, %c0_62], %164 {strides = array<i32>} : memref<18x2x4xf32, #tpu.memory_space<vmem>>, vector<1x2x4xf32>,
    %cst_63 = arith.constant dense<0.000000e+00> : vector<2x4xf32>
    %165 = vector.multi_reduction <add>, %150, %cst_63 [2] : vector<2x4x14xf32> to vector<2x4xf32>
    %cst_64 = arith.constant 0.0714285746 : f32
    %166 = vector.broadcast %cst_64 : f32 to vector<2x4xf32>
    %167 = arith.mulf %165, %166 : vector<2x4xf32>
    %168 = vector.broadcast %139 : vector<1x4xf32> to vector<2x4xf32>
    %169 = arith.addf %167, %168 : vector<2x4xf32>
    %c16 = arith.constant 16 : index
    %c0_65 = arith.constant 0 : index
    %c0_66 = arith.constant 0 : index
    %170 = vector.load %arg5[%c16, %c0_65, %c0_66] : memref<18x2x4xf32, #tpu.memory_space<vmem>>, vector<1x2x4xf32>
    %171 = vector.shape_cast %170 : vector<1x2x4xf32> to vector<2x4xf32>
    %172 = vector.shape_cast %169 : vector<2x4xf32> to vector<1x2x4xf32>
    tpu.vector_store %arg5[%c16, %c0_65, %c0_66], %172 {strides = array<i32>} : memref<18x2x4xf32, #tpu.memory_space<vmem>>, vector<1x2x4xf32>,
    %173 = vector.extract_strided_slice %98 {offsets = [2, 0, 0], sizes = [1, 4, 3], strides = [1, 1, 1]} : vector<3x4x3xf32> to vector<1x4x3xf32>
    %174 = vector.extract_strided_slice %99 {offsets = [2, 0], sizes = [1, 4], strides = [1, 1]} : vector<3x4xf32> to vector<1x4xf32>
    %175 = vector.extract_strided_slice %173 {offsets = [0, 0, 0], sizes = [1, 4, 1], strides = [1, 1, 1]} : vector<1x4x3xf32> to vector<1x4x1xf32>
    %176 = vector.broadcast %175 : vector<1x4x1xf32> to vector<2x4x14xf32>
    %177 = arith.mulf %100, %176 : vector<2x4x14xf32>
    %178 = vector.extract_strided_slice %173 {offsets = [0, 0, 1], sizes = [1, 4, 1], strides = [1, 1, 1]} : vector<1x4x3xf32> to vector<1x4x1xf32>
    %179 = vector.broadcast %178 : vector<1x4x1xf32> to vector<2x4x14xf32>
    %180 = arith.mulf %101, %179 : vector<2x4x14xf32>
    %181 = arith.addf %177, %180 : vector<2x4x14xf32>
    %182 = vector.extract_strided_slice %173 {offsets = [0, 0, 2], sizes = [1, 4, 1], strides = [1, 1, 1]} : vector<1x4x3xf32> to vector<1x4x1xf32>
    %183 = vector.broadcast %182 : vector<1x4x1xf32> to vector<2x4x14xf32>
    %184 = arith.mulf %102, %183 : vector<2x4x14xf32>
    %185 = arith.addf %181, %184 : vector<2x4x14xf32>
    %cst_67 = arith.constant dense<0xFF800000> : vector<2x4xf32>
    %186 = vector.multi_reduction <maximumf>, %185, %cst_67 [2] : vector<2x4x14xf32> to vector<2x4xf32>
    %187 = vector.broadcast %174 : vector<1x4xf32> to vector<2x4xf32>
    %188 = arith.addf %186, %187 : vector<2x4xf32>
    %c5 = arith.constant 5 : index
    %c0_68 = arith.constant 0 : index
    %c0_69 = arith.constant 0 : index
    %189 = vector.load %arg5[%c5, %c0_68, %c0_69] : memref<18x2x4xf32, #tpu.memory_space<vmem>>, vector<1x2x4xf32>
    %190 = vector.shape_cast %189 : vector<1x2x4xf32> to vector<2x4xf32>
    %191 = vector.shape_cast %188 : vector<2x4xf32> to vector<1x2x4xf32>
    tpu.vector_store %arg5[%c5, %c0_68, %c0_69], %191 {strides = array<i32>} : memref<18x2x4xf32, #tpu.memory_space<vmem>>, vector<1x2x4xf32>,
    %cst_70 = arith.constant dense<0x7F800000> : vector<2x4xf32>
    %192 = vector.multi_reduction <minimumf>, %185, %cst_70 [2] : vector<2x4x14xf32> to vector<2x4xf32>
    %cst_71 = arith.constant 0.000000e+00 : f32
    %193 = vector.broadcast %cst_71 : f32 to vector<2x4xf32>
    %194 = arith.subf %193, %192 : vector<2x4xf32>
    %195 = vector.broadcast %174 : vector<1x4xf32> to vector<2x4xf32>
    %196 = arith.subf %194, %195 : vector<2x4xf32>
    %c11 = arith.constant 11 : index
    %c0_72 = arith.constant 0 : index
    %c0_73 = arith.constant 0 : index
    %197 = vector.load %arg5[%c11, %c0_72, %c0_73] : memref<18x2x4xf32, #tpu.memory_space<vmem>>, vector<1x2x4xf32>
    %198 = vector.shape_cast %197 : vector<1x2x4xf32> to vector<2x4xf32>
    %199 = vector.shape_cast %196 : vector<2x4xf32> to vector<1x2x4xf32>
    tpu.vector_store %arg5[%c11, %c0_72, %c0_73], %199 {strides = array<i32>} : memref<18x2x4xf32, #tpu.memory_space<vmem>>, vector<1x2x4xf32>,
    %cst_74 = arith.constant dense<0.000000e+00> : vector<2x4xf32>
    %200 = vector.multi_reduction <add>, %185, %cst_74 [2] : vector<2x4x14xf32> to vector<2x4xf32>
    %cst_75 = arith.constant 0.0714285746 : f32
    %201 = vector.broadcast %cst_75 : f32 to vector<2x4xf32>
    %202 = arith.mulf %200, %201 : vector<2x4xf32>
    %203 = vector.broadcast %174 : vector<1x4xf32> to vector<2x4xf32>
    %204 = arith.addf %202, %203 : vector<2x4xf32>
    %c17 = arith.constant 17 : index
    %c0_76 = arith.constant 0 : index
    %c0_77 = arith.constant 0 : index
    %205 = vector.load %arg5[%c17, %c0_76, %c0_77] : memref<18x2x4xf32, #tpu.memory_space<vmem>>, vector<1x2x4xf32>
    %206 = vector.shape_cast %205 : vector<1x2x4xf32> to vector<2x4xf32>
    %207 = vector.shape_cast %204 : vector<2x4xf32> to vector<1x2x4xf32>
    tpu.vector_store %arg5[%c17, %c0_76, %c0_77], %207 {strides = array<i32>} : memref<18x2x4xf32, #tpu.memory_space<vmem>>, vector<1x2x4xf32>,
    return
  }
}

</mosaic_0001>

<bundles_post_ra>
// kernel: tpu_custom_call.1
= control target key start
LH: loop header
LB: loop body
LE: loop exit
PB: predicated region body
PF: predicated region fallthrough
CT: control target
= control target key end

     0   :  { %v56_v0 = vlaneseq  ;;  %v841_v1 = vmov 0   ;;  %v842_v7 = vmov 1   ;;  %s843_s25 = smov 127   ;;  %vm49_vm0 = vcmask 117760   ;;  %s845_s7 = smov 126   ;;  %s1277_s1 = inlined_call_operand.vmem [shape: f32[3,4,2], index: 1, kind: input, shape index: {}]   ;;  %s1278_s2 = inlined_call_operand.vmem [shape: f32[3,4], index: 2, kind: input, shape index: {}]   ;;  %s1279_s0 = inlined_call_operand.vmem [shape: f32[2,4,16], index: 0, kind: input, shape index: {}]   ;;  %s1280_s5 = inlined_call_operand.vmem [shape: f32[18,2,4], index: 5, kind: output, shape index: {}]   ;;  %s1281_s3 = inlined_call_operand.vmem [shape: f32[3,4,3], index: 3, kind: input, shape index: {}]   ;;  %s1282_s4 = inlined_call_operand.vmem [shape: f32[3,4], index: 4, kind: input, shape index: {}]  }
   0x1   :  { %829 = vset.pattern.permute.xlu0 %v841_v1  ;;  %v22_v2 = vld [vmem:[%s1277_s1] sm:$0xf]  ;;  %831 = vset.pattern.permute.xlu1 %v841_v1  ;;  %v23_v3 = vld [vmem:[%s1277_s1 + $0x4] sm:$0xf]  ;;  %v24_v45 = vld [vmem:[%s1277_s1 + $0x8] sm:$0xf] }
   0x2   :  { %28 = vperm.xlu0 %829, %v22_v2   ;;  %152 = vperm.xlu1 %831, %v23_v3   ;;  %v885_v4 = vshrl.u32 %v56_v0, 7  ;;  %v890_v5 = vld [vmem:[%s1278_s2] sm:$0x7]  ;;  %v913_v16 = vld [vmem:[%s1279_s0 + $0x4] sm:$0xf]  ;;  %vm85_vm1 = vcmask 1041409  }
   0x3   :  { %v906_v13 = vld [vmem:[%s1279_s0] sm:$0xf]  ;;  %vm88_vm2 = vcmask 25600   ;;  %vm433_vm3 = vcmask 109568  }
   0x4   :  { %v181_v6 = vsub.s32 1, %v885_v4  ;;  %v58_v9 = vsub.s32 0, %v885_v4 }
   0x6   :  { %830 = vset.pattern.permute.xlu0 %v842_v7  ;;  %832 = vset.pattern.permute.xlu1 %v842_v7  ;;  %v182_v8 = vrot.slane %v890_v5, %v181_v6  ;;  %v59_v10 = vrot.slane %v890_v5, %v58_v9 }
   0x7   :  { %34 = vperm.xlu0 %830, %v22_v2   ;;  %158 = vperm.xlu1 %832, %v23_v3  }
   0xb   :  { %185 = vbcast.lane.b32.xlu1 %v182_v8, 256  ;;  %62 = vbcast.lane.b32.xlu0 %v59_v10, 256 }
   0xc   :  { %833 = vset.pattern.permute.xlu1 %v841_v1 }
  0x81   :  { %v29_v11 = vpop.permute.xlu0 %28  ;;  %v153_v12 = vpop.permute.xlu1 %152 }
  0x82   :  { %v31_v22 = vmul.f32 %v29_v11, %v906_v13  ;;  %v32_v25 = vmul.f32 %v29_v11, %v913_v16  ;;  %v155_v32 = vmul.f32 %v153_v12, %v906_v13  ;;  %v156_v37 = vmul.f32 %v153_v12, %v913_v16 }
  0x86   :  { %v35_v14 = vpop.permute.xlu0 %34  ;;  %v159_v17 = vpop.permute.xlu1 %158 }
  0x87   :  { %v37_v15 = vmul.f32 %v35_v14, %v906_v13  ;;  %v38_v18 = vmul.f32 %v35_v14, %v913_v16  ;;  %v161_v19 = vmul.f32 %v159_v17, %v906_v13  ;;  %v162_v20 = vmul.f32 %v159_v17, %v913_v16 }
  0x89   :  { %41 = vrot.lane.b32.xlu1 %v37_v15, %s843_s25  ;;  %v301_v15 = vsub.s32 2, %v885_v4 }
  0x8a   :  { %v921_v21 = vpop.permute.xlu1 %185  ;;  %v942_v47 = vpop.permute.xlu0 %62 }
  0x8b   :  { %v302_v17 = vrot.slane %v890_v5, %v301_v15 }
  0x8d   :  { %43 = vrot.lane.b32.xlu1 %v38_v18, %s843_s25 }
  0x91   :  { %165 = vrot.lane.b32.xlu1 %v161_v19, %s843_s25 }
  0x95   :  { %167 = vrot.lane.b32.xlu1 %v162_v20, %s843_s25 }
  0xfb   :  { %v42_v23 = vpop.permute.xlu1 %41 }
  0xfc   :  { %v47_v24 = vadd.f32 %v42_v23, %v31_v22 }
  0xfe   :  { %v50_v26 = vsel %vm49_vm0, %v47_v24, -inf  ;;  %v90_v34 = vsel %vm49_vm0, %v47_v24, inf  ;;  %v120_v35 = vsel %vm49_vm0, %v47_v24, 0.0 }
  0xff   :  { %v44_v27 = vpop.permute.xlu1 %43  ;;  %51 = vmax.xlane.f32.xlu1 %v50_v26 }
 0x100   :  { %v48_v28 = vadd.f32 %v44_v27, %v32_v25 }
 0x102   :  { %v53_v29 = vsel %vm49_vm0, %v48_v28, -inf  ;;  %v93_v30 = vsel %vm49_vm0, %v48_v28, inf  ;;  %v123_v39 = vsel %vm49_vm0, %v48_v28, 0.0 }
 0x103   :  { %54 = vmax.xlane.f32.xlu0 %v53_v29  ;;  %v166_v31 = vpop.permute.xlu1 %165  ;;  %94 = vmin.xlane.f32.xlu1 %v93_v30 }
 0x104   :  { %v171_v33 = vadd.f32 %v166_v31, %v155_v32 }
 0x106   :  { %v173_v40 = vsel %vm49_vm0, %v171_v33, -inf  ;;  %v210_v42 = vsel %vm49_vm0, %v171_v33, inf  ;;  %v240_v44 = vsel %vm49_vm0, %v171_v33, 0.0 }
 0x107   :  { %v168_v36 = vpop.permute.xlu1 %167  ;;  %91 = vmin.xlane.f32.xlu0 %v90_v34  ;;  %121 = vadd.xlane.f32.xlu1 %v120_v35 }
 0x108   :  { %v172_v38 = vadd.f32 %v168_v36, %v156_v37  ;;  %v76_v37 = vand.u32 127, %v56_v0 }
 0x10a   :  { %v176_v41 = vsel %vm49_vm0, %v172_v38, -inf  ;;  %v213_v43 = vsel %vm49_vm0, %v172_v38, inf  ;;  %v243_v46 = vsel %vm49_vm0, %v172_v38, 0.0 }
 0x10b   :  { %124 = vadd.xlane.f32.xlu0 %v123_v39  ;;  %174 = vmax.xlane.f32.xlu1 %v173_v40  ;;  %v984_v40 = vsub.s32 %v76_v37, %v885_v4  ;;  %v1038_v37 = vld [vmem:[%s1282_s4] sm:$0x7] }
 0x10f   :  { %177 = vmax.xlane.f32.xlu0 %v176_v41  ;;  %211 = vmin.xlane.f32.xlu1 %v210_v42 }
 0x113   :  { %214 = vmin.xlane.f32.xlu0 %v213_v43  ;;  %241 = vadd.xlane.f32.xlu1 %v240_v44 }
 0x124   :  { %272 = vperm.xlu1 %833, %v24_v45  }
 0x129   :  { %278 = vperm.xlu0 %830, %v24_v45  }
 0x148   :  { %244 = vadd.xlane.f32.xlu0 %v243_v46 }
 0x18c   :  { %v52_v56 = vpop.xlane.xlu1 %51 }
 0x18d   :  { %v65_v18 = vadd.f32 %v942_v47, %v52_v56 }
 0x190   :  { %v55_v48 = vpop.xlane.xlu0 %54  ;;  %v95_v57 = vpop.xlane.xlu1 %94 }
 0x191   :  { %v66_v19 = vadd.f32 %v942_v47, %v55_v48  ;;  %v97_v20 = vsub.f32 0.0, %v95_v57 }
 0x193   :  { %v99_v23 = vsub.f32 %v97_v20, %v942_v47 }
 0x194   :  { %v944_v49 = vpop.xlane.xlu0 %91  ;;  %v122_v58 = vpop.xlane.xlu1 %121 }
 0x195   :  { %v126_v24 = vmul.f32 0.06666667, %v122_v58  ;;  %v390_v58 = vld [vmem:[%s1281_s3] sm:$0xf] }
 0x197   :  { %v128_v25 = vadd.f32 %v126_v24, %v942_v47 }
 0x198   :  { %v946_v50 = vpop.xlane.xlu0 %124  ;;  %v952_v59 = vpop.xlane.xlu1 %174 }
 0x19c   :  { %v178_v51 = vpop.xlane.xlu0 %177  ;;  %v954_v60 = vpop.xlane.xlu1 %211 }
 0x19d   :  { %v189_v22 = vadd.f32 %v921_v21, %v178_v51 }
 0x1a0   :  { %v215_v52 = vpop.xlane.xlu0 %214  ;;  %v956_v61 = vpop.xlane.xlu1 %241 }
 0x1a1   :  { %v217_v26 = vsub.f32 0.0, %v215_v52 }
 0x1a3   :  { %v219_v5 = vsub.f32 %v217_v26, %v921_v21 }
 0x1a4   :  { %v273_v62 = vpop.permute.xlu1 %272 }
 0x1a5   :  { %v275_v63 = vmul.f32 %v273_v62, %v906_v13  ;;  %v276_v8 = vmul.f32 %v273_v62, %v913_v16  ;;  %v844_v62 = vmov 2  }
 0x1a6   :  { %835 = vset.pattern.permute.xlu0 %v844_v62 }
 0x1a8   :  { %v279_v53 = vpop.permute.xlu0 %278 }
 0x1a9   :  { %v281_v54 = vmul.f32 %v279_v53, %v906_v13  ;;  %v282_v55 = vmul.f32 %v279_v53, %v913_v16 }
 0x1ab   :  { %285 = vrot.lane.b32.xlu1 %v281_v54, %s843_s25 }
 0x1af   :  { %287 = vrot.lane.b32.xlu1 %v282_v55, %s843_s25 }
 0x1d5   :  { %v245_v27 = vpop.xlane.xlu0 %244 }
 0x1d6   :  { %v247_v28 = vmul.f32 0.06666667, %v245_v27 }
 0x1d8   :  { %v249_v29 = vadd.f32 %v247_v28, %v921_v21 }
 0x21d   :  { %v286_v2 = vpop.permute.xlu1 %285 }
 0x21e   :  { %v291_v3 = vadd.f32 %v286_v2, %v275_v63 }
 0x220   :  { %v293_v10 = vsel %vm49_vm0, %v291_v3, -inf  ;;  %v330_v32 = vsel %vm49_vm0, %v291_v3, inf  ;;  %v360_v33 = vsel %vm49_vm0, %v291_v3, 0.0 }
 0x221   :  { %294 = vmax.xlane.f32.xlu0 %v293_v10  ;;  %v288_v11 = vpop.permute.xlu1 %287 }
 0x222   :  { %v292_v12 = vadd.f32 %v288_v11, %v276_v8 }
 0x224   :  { %v296_v14 = vsel %vm49_vm0, %v292_v12, -inf  ;;  %v333_v30 = vsel %vm49_vm0, %v292_v12, inf  ;;  %v363_v31 = vsel %vm49_vm0, %v292_v12, 0.0 }
 0x225   :  { %297 = vmax.xlane.f32.xlu1 %v296_v14 }
 0x236   :  { %70 = vperm.xlu1 %833, %v65_v18  }
 0x237   :  { %305 = vbcast.lane.b32.xlu0 %v302_v17, 256 }
 0x23a   :  { %73 = vperm.xlu1 %833, %v66_v19  }
 0x23e   :  { %196 = vperm.xlu1 %833, %v189_v22  }
 0x242   :  { %106 = vperm.xlu1 %833, %v99_v23  }
 0x246   :  { %133 = vperm.xlu1 %833, %v128_v25  }
 0x24a   :  { %226 = vperm.xlu1 %833, %v219_v5  }
 0x24e   :  { %256 = vperm.xlu1 %833, %v249_v29  }
 0x256   :  { %334 = vmin.xlane.f32.xlu0 %v333_v30 }
 0x25a   :  { %364 = vadd.xlane.f32.xlu0 %v363_v31 }
 0x272   :  { %331 = vmin.xlane.f32.xlu1 %v330_v32 }
 0x276   :  { %361 = vadd.xlane.f32.xlu1 %v360_v33 }
 0x2ae   :  { %v295_v34 = vpop.xlane.xlu0 %294 }
 0x2b2   :  { %v977_v35 = vpop.permute.xlu0 %305  ;;  %v979_v36 = vpop.xlane.xlu1 %297 }
 0x2b3   :  { %v308_v38 = vadd.f32 %v977_v35, %v295_v34 }
 0x2b5   :  { %313 = vperm.xlu1 %833, %v308_v38   ;;  %v443_v38 = vrot.slane %v1038_v37, %v58_v9 }
 0x2b6   :  { %v71_v39 = vpop.permute.xlu1 %70 }
 0x2b7   :  { %v80_v42 = vrot.slane %v71_v39, %v984_v40 }
 0x2ba   :  { %v74_v41 = vpop.permute.xlu1 %73 }
 0x2bb   :  { %v84_v43 = vrot.slane %v74_v41, %v984_v40 }
 0x2bd   :  { %v86_v44 = vsel %vm85_vm1, %v84_v43, %v80_v42 }
 0x2be   :  { %89 = vst.msk [vmem:[%s1280_s5] sm:$0x3] %vm88_vm2, %v86_v44  ;;  %v993_v0 = vpop.permute.xlu1 %196 }
 0x2c2   :  { %v995_v45 = vpop.permute.xlu1 %106 }
 0x2c6   :  { %v997_v46 = vpop.permute.xlu1 %133 }
 0x2ca   :  { %v999_v48 = vpop.permute.xlu1 %226 }
 0x2ce   :  { %v1001_v51 = vpop.permute.xlu1 %256 }
 0x2e3   :  { %v1021_v14 = vpop.xlane.xlu0 %334 }
 0x2e7   :  { %v1023_v17 = vpop.xlane.xlu0 %364 }
 0x2ff   :  { %v332_v52 = vpop.xlane.xlu1 %331 }
 0x300   :  { %v336_v53 = vsub.f32 0.0, %v332_v52 }
 0x302   :  { %v338_v54 = vsub.f32 %v336_v53, %v977_v35 }
 0x303   :  { %v362_v55 = vpop.xlane.xlu1 %361 }
 0x304   :  { %v366_v56 = vmul.f32 0.06666667, %v362_v55  ;;  %343 = vperm.xlu1 %833, %v338_v54  }
 0x306   :  { %v368_v57 = vadd.f32 %v366_v56, %v977_v35 }
 0x308   :  { %373 = vperm.xlu1 %833, %v368_v57  }
 0x30c   :  { %396 = vperm.xlu1 %833, %v390_v58  }
 0x310   :  { %834 = vset.pattern.permute.xlu1 %v842_v7 }
 0x311   :  { %402 = vperm.xlu1 %834, %v390_v58  }
 0x315   :  { %836 = vset.pattern.permute.xlu1 %v841_v1 }
 0x334   :  { %v1011_v63 = vpop.permute.xlu1 %313 }
 0x383   :  { %v1013_v2 = vpop.permute.xlu1 %343 }
 0x387   :  { %v1015_v3 = vpop.permute.xlu1 %373 }
 0x38b   :  { %v397_v8 = vpop.permute.xlu1 %396 }
 0x38c   :  { %v399_v18 = vmul.f32 %v397_v8, %v906_v13  ;;  %v400_v27 = vmul.f32 %v397_v8, %v913_v16  ;;  %v391_v8 = vld [vmem:[%s1281_s3 + $0x4] sm:$0xf] }
 0x390   :  { %v403_v10 = vpop.permute.xlu1 %402 }
 0x391   :  { %v405_v11 = vmul.f32 %v403_v10, %v906_v13  ;;  %v406_v12 = vmul.f32 %v403_v10, %v913_v16 }
 0x393   :  { %411 = vrot.lane.b32.xlu1 %v406_v12, %s843_s25  ;;  %409 = vrot.lane.b32.xlu0 %v405_v11, %s843_s25 }
 0x397   :  { %418 = vperm.xlu0 %835, %v390_v58  }
 0x405   :  { %v410_v19 = vpop.permute.xlu0 %409  ;;  %v412_v25 = vpop.permute.xlu1 %411 }
 0x406   :  { %v415_v20 = vadd.f32 %v410_v19, %v399_v18  ;;  %v416_v28 = vadd.f32 %v412_v25, %v400_v27 }
 0x416   :  { %v419_v22 = vpop.permute.xlu0 %418 }
 0x417   :  { %v421_v23 = vmul.f32 %v419_v22, %v906_v13  ;;  %v422_v24 = vmul.f32 %v419_v22, %v913_v16 }
 0x419   :  { %425 = vrot.lane.b32.xlu1 %v421_v23, %s845_s7 }
 0x41d   :  { %427 = vrot.lane.b32.xlu1 %v422_v24, %s845_s7 }
 0x48b   :  { %v426_v26 = vpop.permute.xlu1 %425 }
 0x48c   :  { %v431_v5 = vadd.f32 %v426_v26, %v415_v20 }
 0x48e   :  { %v434_v29 = vsel %vm433_vm3, %v431_v5, -inf  ;;  %v471_v33 = vsel %vm433_vm3, %v431_v5, inf  ;;  %v501_v34 = vsel %vm433_vm3, %v431_v5, 0.0 }
 0x48f   :  { %435 = vmax.xlane.f32.xlu0 %v434_v29  ;;  %v428_v30 = vpop.permute.xlu1 %427 }
 0x490   :  { %v432_v31 = vadd.f32 %v428_v30, %v416_v28 }
 0x492   :  { %v437_v32 = vsel %vm433_vm3, %v432_v31, -inf  ;;  %v474_v39 = vsel %vm433_vm3, %v432_v31, inf  ;;  %v504_v41 = vsel %vm433_vm3, %v432_v31, 0.0 }
 0x493   :  { %438 = vmax.xlane.f32.xlu1 %v437_v32 }
 0x497   :  { %472 = vmin.xlane.f32.xlu1 %v471_v33 }
 0x49b   :  { %502 = vadd.xlane.f32.xlu1 %v501_v34 }
 0x4a5   :  { %446 = vbcast.lane.b32.xlu0 %v443_v38, 256 }
 0x4c4   :  { %475 = vmin.xlane.f32.xlu0 %v474_v39 }
 0x4c8   :  { %505 = vadd.xlane.f32.xlu0 %v504_v41 }
 0x51c   :  { %v436_v42 = vpop.xlane.xlu0 %435 }
 0x520   :  { %v1045_v43 = vpop.permute.xlu0 %446  ;;  %v439_v44 = vpop.xlane.xlu1 %438 }
 0x521   :  { %v1048_v52 = vadd.f32 %v1045_v43, %v439_v44  ;;  %v449_v53 = vadd.f32 %v1045_v43, %v436_v42 }
 0x523   :  { %454 = vperm.xlu1 %836, %v449_v53  }
 0x524   :  { %v473_v54 = vpop.xlane.xlu1 %472 }
 0x525   :  { %v477_v55 = vsub.f32 0.0, %v473_v54 }
 0x527   :  { %v479_v9 = vsub.f32 %v477_v55, %v1045_v43 }
 0x528   :  { %v503_v56 = vpop.xlane.xlu1 %502 }
 0x529   :  { %v507_v57 = vmul.f32 0.071428575, %v503_v56  ;;  %484 = vperm.xlu1 %836, %v479_v9   ;;  %v96_v9 = vsub.f32 0.0, %v944_v49 }
 0x52b   :  { %v509_v58 = vadd.f32 %v507_v57, %v1045_v43  ;;  %v98_v56 = vsub.f32 %v96_v9, %v942_v47  ;;  %v127_v57 = vmul.f32 0.06666667, %v946_v50  ;;  %v309_v50 = vadd.f32 %v977_v35, %v979_v36 }
 0x52c   :  { %v579_v36 = vrot.slane %v1038_v37, %v181_v6 }
 0x52d   :  { %514 = vperm.xlu1 %836, %v509_v58   ;;  %v129_v58 = vadd.f32 %v127_v57, %v942_v47  ;;  %v337_v47 = vsub.f32 0.0, %v1021_v14 }
 0x531   :  { %533 = vperm.xlu1 %836, %v391_v8  }
 0x535   :  { %837 = vset.pattern.permute.xlu1 %v842_v7  ;;  %v1073_v7 = vld [vmem:[%s1281_s3 + $0x8] sm:$0xf] }
 0x536   :  { %539 = vperm.xlu1 %837, %v391_v8  }
 0x551   :  { %v476_v10 = vpop.xlane.xlu0 %475 }
 0x552   :  { %v478_v11 = vsub.f32 0.0, %v476_v10  ;;  %v216_v10 = vsub.f32 0.0, %v954_v60 }
 0x554   :  { %v1058_v12 = vsub.f32 %v478_v11, %v1045_v43  ;;  %v218_v11 = vsub.f32 %v216_v10, %v921_v21 }
 0x555   :  { %v506_v26 = vpop.xlane.xlu0 %505 }
 0x5a2   :  { %v1060_v18 = vpop.permute.xlu1 %454 }
 0x5a8   :  { %v1062_v19 = vpop.permute.xlu1 %484 }
 0x5ac   :  { %v1064_v20 = vpop.permute.xlu1 %514 }
 0x5b0   :  { %v534_v22 = vpop.permute.xlu1 %533 }
 0x5b1   :  { %v536_v27 = vmul.f32 %v534_v22, %v906_v13 }
 0x5b5   :  { %v540_v23 = vpop.permute.xlu1 %539 }
 0x5b6   :  { %v542_v24 = vmul.f32 %v540_v23, %v906_v13  ;;  %v543_v25 = vmul.f32 %v540_v23, %v913_v16  ;;  %v339_v23 = vsub.f32 %v337_v47, %v977_v35 }
 0x5b8   :  { %548 = vrot.lane.b32.xlu1 %v543_v25, %s843_s25  ;;  %546 = vrot.lane.b32.xlu0 %v542_v24, %s843_s25 }
 0x5bc   :  { %675 = vperm.xlu1 %837, %v1073_v7   ;;  %555 = vperm.xlu0 %835, %v391_v8   ;;  %v188_v8 = vadd.f32 %v921_v21, %v952_v59  ;;  %v367_v59 = vmul.f32 0.06666667, %v1023_v17  ;;  %v115_v17 = vrot.slane %v995_v45, %v984_v40 }
 0x5be   :  { %v369_v60 = vadd.f32 %v367_v59, %v977_v35 }
 0x5c0   :  { %838 = vset.pattern.permute.xlu1 %v844_v62  ;;  %839 = vset.pattern.permute.xlu0 %v841_v1 }
 0x5c1   :  { %691 = vperm.xlu1 %838, %v1073_v7  }
 0x5c5   :  { %840 = vset.pattern.permute.xlu1 %v841_v1  ;;  %v537_v1 = vmul.f32 %v534_v22, %v913_v16  ;;  %v246_v22 = vmul.f32 0.06666667, %v956_v61  ;;  %v508_v61 = vmul.f32 0.071428575, %v506_v26  ;;  %v205_v26 = vrot.slane %v993_v0, %v984_v40 }
 0x5c7   :  { %v248_v49 = vadd.f32 %v246_v22, %v921_v21  ;;  %v510_v21 = vadd.f32 %v508_v61, %v1045_v43 }
 0x62a   :  { %v547_v5 = vpop.permute.xlu0 %546  ;;  %v549_v62 = vpop.permute.xlu1 %548 }
 0x62b   :  { %v552_v28 = vadd.f32 %v547_v5, %v536_v27  ;;  %v553_v34 = vadd.f32 %v549_v62, %v537_v1 }
 0x63b   :  { %v556_v29 = vpop.permute.xlu0 %555  ;;  %v1085_v32 = vpop.permute.xlu1 %675 }
 0x63c   :  { %v558_v30 = vmul.f32 %v556_v29, %v906_v13  ;;  %v559_v31 = vmul.f32 %v556_v29, %v913_v16 }
 0x63e   :  { %564 = vrot.lane.b32.xlu1 %v559_v31, %s845_s7  ;;  %562 = vrot.lane.b32.xlu0 %v558_v30, %s845_s7  ;;  %v265_v31 = vrot.slane %v1001_v51, %v984_v40 }
 0x640   :  { %v1087_v33 = vpop.permute.xlu1 %691 }
 0x6b0   :  { %v565_v38 = vpop.permute.xlu1 %564  ;;  %v563_v39 = vpop.permute.xlu0 %562 }
 0x6b1   :  { %v1090_v41 = vadd.f32 %v565_v38, %v553_v34  ;;  %v568_v42 = vadd.f32 %v563_v39, %v552_v28  ;;  %v235_v28 = vrot.slane %v999_v48, %v984_v40  ;;  %v321_v34 = vrot.slane %v1011_v63, %v984_v40 }
 0x6b3   :  { %v573_v44 = vsel %vm433_vm3, %v1090_v41, -inf  ;;  %v570_v53 = vsel %vm433_vm3, %v568_v42, -inf  ;;  %v607_v54 = vsel %vm433_vm3, %v568_v42, inf  ;;  %v637_v55 = vsel %vm433_vm3, %v568_v42, 0.0 }
 0x6b4   :  { %574 = vmax.xlane.f32.xlu1 %v573_v44  ;;  %571 = vmax.xlane.f32.xlu0 %v570_v53  ;;  %v351_v42 = vrot.slane %v1013_v2, %v984_v40 }
 0x6b8   :  { %608 = vmin.xlane.f32.xlu1 %v607_v54  ;;  %v381_v54 = vrot.slane %v1015_v3, %v984_v40 }
 0x6bc   :  { %638 = vadd.xlane.f32.xlu1 %v637_v55 }
 0x6ca   :  { %103 = vperm.xlu0 %839, %v98_v56   ;;  %v462_v56 = vrot.slane %v1060_v18, %v984_v40 }
 0x6ce   :  { %136 = vperm.xlu0 %839, %v129_v58  }
 0x6d2   :  { %193 = vperm.xlu0 %839, %v188_v8   ;;  %v492_v8 = vrot.slane %v1062_v19, %v984_v40 }
 0x6d6   :  { %223 = vperm.xlu0 %839, %v218_v11  }
 0x6da   :  { %253 = vperm.xlu0 %839, %v248_v49   ;;  %v522_v49 = vrot.slane %v1064_v20, %v984_v40  ;;  %v678_v20 = vmul.f32 %v1085_v32, %v906_v13 }
 0x6de   :  { %316 = vperm.xlu0 %839, %v309_v50  }
 0x6e2   :  { %346 = vperm.xlu0 %839, %v339_v23  }
 0x6e6   :  { %376 = vperm.xlu0 %839, %v369_v60  }
 0x6ea   :  { %457 = vperm.xlu0 %839, %v1048_v52  }
 0x6ee   :  { %487 = vperm.xlu0 %839, %v1058_v12   ;;  %v141_v12 = vrot.slane %v997_v46, %v984_v40 }
 0x6f2   :  { %517 = vperm.xlu0 %839, %v510_v21  }
 0x6f6   :  { %582 = vbcast.lane.b32.xlu0 %v579_v36, 256  ;;  %v679_v36 = vmul.f32 %v1085_v32, %v913_v16 }
 0x741   :  { %v572_v14 = vpop.xlane.xlu0 %571  ;;  %v575_v11 = vpop.xlane.xlu1 %574 }
 0x745   :  { %v609_v23 = vpop.xlane.xlu1 %608 }
 0x746   :  { %v613_v61 = vsub.f32 0.0, %v609_v23 }
 0x749   :  { %v104_v24 = vpop.permute.xlu0 %103  ;;  %v639_v32 = vpop.xlane.xlu1 %638 }
 0x74a   :  { %v111_v35 = vrot.slane %v104_v24, %v984_v40  ;;  %v695_v24 = vmul.f32 %v1087_v33, %v913_v16 }
 0x74c   :  { %v116_v52 = vsel %vm85_vm1, %v115_v17, %v111_v35  ;;  %v640_v17 = vsel %vm433_vm3, %v1090_v41, 0.0 }
 0x74d   :  { %807 = vst.msk [vmem:[%s1280_s5 + $0xc] sm:$0x3] %vm88_vm2, %v116_v52  ;;  %v137_v43 = vpop.permute.xlu0 %136 }
 0x74e   :  { %v145_v6 = vrot.slane %v137_v43, %v984_v40 }
 0x750   :  { %v146_v25 = vsel %vm85_vm1, %v145_v6, %v141_v12 }
 0x751   :  { %808 = vst.msk [vmem:[%s1280_s5 + $0x18] sm:$0x3] %vm88_vm2, %v146_v25  ;;  %v194_v45 = vpop.permute.xlu0 %193 }
 0x752   :  { %v201_v27 = vrot.slane %v194_v45, %v984_v40 }
 0x754   :  { %v206_v5 = vsel %vm85_vm1, %v205_v26, %v201_v27 }
 0x755   :  { %809 = vst.msk [vmem:[%s1280_s5 + $0x2] sm:$0x3] %vm88_vm2, %v206_v5  ;;  %v224_v46 = vpop.permute.xlu0 %223 }
 0x756   :  { %v231_v29 = vrot.slane %v224_v46, %v984_v40 }
 0x758   :  { %v236_v30 = vsel %vm85_vm1, %v235_v28, %v231_v29 }
 0x759   :  { %810 = vst.msk [vmem:[%s1280_s5 + $0xe] sm:$0x3] %vm88_vm2, %v236_v30  ;;  %v254_v0 = vpop.permute.xlu0 %253 }
 0x75a   :  { %v261_v62 = vrot.slane %v254_v0, %v984_v40 }
 0x75c   :  { %v266_v1 = vsel %vm85_vm1, %v265_v31, %v261_v62 }
 0x75d   :  { %811 = vst.msk [vmem:[%s1280_s5 + $0x1a] sm:$0x3] %vm88_vm2, %v266_v1  ;;  %v317_v48 = vpop.permute.xlu0 %316 }
 0x75e   :  { %v325_v38 = vrot.slane %v317_v48, %v984_v40  ;;  %v715_v48 = vrot.slane %v1038_v37, %v301_v15 }
 0x760   :  { %v326_v39 = vsel %vm85_vm1, %v325_v38, %v321_v34 }
 0x761   :  { %812 = vst.msk [vmem:[%s1280_s5 + $0x4] sm:$0x3] %vm88_vm2, %v326_v39  ;;  %v347_v51 = vpop.permute.xlu0 %346 }
 0x762   :  { %v355_v44 = vrot.slane %v347_v51, %v984_v40 }
 0x764   :  { %v356_v53 = vsel %vm85_vm1, %v355_v44, %v351_v42  ;;  %v643_v42 = vmul.f32 0.071428575, %v639_v32 }
 0x765   :  { %813 = vst.msk [vmem:[%s1280_s5 + $0x10] sm:$0x3] %vm88_vm2, %v356_v53  ;;  %v377_v63 = vpop.permute.xlu0 %376 }
 0x766   :  { %v385_v55 = vrot.slane %v377_v63, %v984_v40 }
 0x768   :  { %v386_v9 = vsel %vm85_vm1, %v385_v55, %v381_v54 }
 0x769   :  { %814 = vst.msk [vmem:[%s1280_s5 + $0x1c] sm:$0x3] %vm88_vm2, %v386_v9  ;;  %v458_v2 = vpop.permute.xlu0 %457 }
 0x76a   :  { %v466_v57 = vrot.slane %v458_v2, %v984_v40 }
 0x76c   :  { %v467_v58 = vsel %vm85_vm1, %v466_v57, %v462_v56 }
 0x76d   :  { %815 = vst.msk [vmem:[%s1280_s5 + $0x6] sm:$0x3] %vm88_vm2, %v467_v58  ;;  %v488_v3 = vpop.permute.xlu0 %487 }
 0x76e   :  { %v496_v10 = vrot.slane %v488_v3, %v984_v40 }
 0x770   :  { %v497_v22 = vsel %vm85_vm1, %v496_v10, %v492_v8 }
 0x771   :  { %816 = vst.msk [vmem:[%s1280_s5 + $0x12] sm:$0x3] %vm88_vm2, %v497_v22  ;;  %v518_v18 = vpop.permute.xlu0 %517 }
 0x772   :  { %v526_v50 = vrot.slane %v518_v18, %v984_v40 }
 0x774   :  { %v527_v47 = vsel %vm85_vm1, %v526_v50, %v522_v49 }
 0x775   :  { %817 = vst.msk [vmem:[%s1280_s5 + $0x1e] sm:$0x3] %vm88_vm2, %v527_v47  ;;  %v583_v19 = vpop.permute.xlu0 %582 }
 0x776   :  { %v586_v59 = vadd.f32 %v583_v19, %v575_v11  ;;  %v585_v60 = vadd.f32 %v583_v19, %v572_v14  ;;  %v615_v21 = vsub.f32 %v613_v61, %v583_v19  ;;  %v694_v14 = vmul.f32 %v1087_v33, %v906_v13 }
 0x777   :  { %v645_v63 = vadd.f32 %v643_v42, %v583_v19 }
 0x778   :  { %593 = vperm.xlu0 %839, %v586_v59   ;;  %590 = vperm.xlu1 %840, %v585_v60  }
 0x77c   :  { %669 = vperm.xlu0 %839, %v1073_v7   ;;  %620 = vperm.xlu1 %840, %v615_v21   ;;  %v610_v7 = vsel %vm433_vm3, %v1090_v41, inf }
 0x780   :  { %682 = vrot.lane.b32.xlu0 %v678_v20, %s843_s25 }
 0x784   :  { %684 = vrot.lane.b32.xlu0 %v679_v36, %s843_s25 }
 0x788   :  { %698 = vrot.lane.b32.xlu0 %v694_v14, %s845_s7 }
 0x78c   :  { %700 = vrot.lane.b32.xlu0 %v695_v24, %s845_s7 }
 0x7ab   :  { %611 = vmin.xlane.f32.xlu0 %v610_v7 }
 0x7af   :  { %641 = vadd.xlane.f32.xlu0 %v640_v17 }
 0x7f7   :  { %v594_v35 = vpop.permute.xlu0 %593  ;;  %v591_v52 = vpop.permute.xlu1 %590 }
 0x7f8   :  { %v602_v43 = vrot.slane %v594_v35, %v984_v40  ;;  %v598_v12 = vrot.slane %v591_v52, %v984_v40 }
 0x7fa   :  { %v603_v6 = vsel %vm85_vm1, %v602_v43, %v598_v12 }
 0x7fb   :  { %818 = vst.msk [vmem:[%s1280_s5 + $0x8] sm:$0x3] %vm88_vm2, %v603_v6  ;;  %v670_v33 = vpop.permute.xlu0 %669  ;;  %v621_v18 = vpop.permute.xlu1 %620 }
 0x7fc   :  { %v672_v41 = vmul.f32 %v670_v33, %v906_v13  ;;  %v673_v5 = vmul.f32 %v670_v33, %v913_v16  ;;  %v628_v23 = vrot.slane %v621_v18, %v984_v40 }
 0x7ff   :  { %v683_v25 = vpop.permute.xlu0 %682 }
 0x800   :  { %v688_v26 = vadd.f32 %v683_v25, %v672_v41 }
 0x803   :  { %v685_v45 = vpop.permute.xlu0 %684 }
 0x804   :  { %v689_v28 = vadd.f32 %v685_v45, %v673_v5 }
 0x807   :  { %v699_v27 = vpop.permute.xlu0 %698 }
 0x808   :  { %v704_v46 = vadd.f32 %v699_v27, %v688_v26 }
 0x80a   :  { %v743_v29 = vsel %vm433_vm3, %v704_v46, inf  ;;  %v773_v62 = vsel %vm433_vm3, %v704_v46, 0.0  ;;  %v706_v13 = vsel %vm433_vm3, %v704_v46, -inf }
 0x80b   :  { %744 = vmin.xlane.f32.xlu0 %v743_v29  ;;  %v701_v30 = vpop.permute.xlu0 %700 }
 0x80c   :  { %v705_v0 = vadd.f32 %v701_v30, %v689_v28 }
 0x80e   :  { %v746_v31 = vsel %vm433_vm3, %v705_v0, inf  ;;  %v776_v1 = vsel %vm433_vm3, %v705_v0, 0.0  ;;  %v709_v16 = vsel %vm433_vm3, %v705_v0, -inf }
 0x80f   :  { %747 = vmin.xlane.f32.xlu0 %v746_v31 }
 0x813   :  { %774 = vadd.xlane.f32.xlu0 %v773_v62 }
 0x817   :  { %777 = vadd.xlane.f32.xlu0 %v776_v1 }
 0x81b   :  { %707 = vmax.xlane.f32.xlu0 %v706_v13 }
 0x81f   :  { %710 = vmax.xlane.f32.xlu0 %v709_v16 }
 0x835   :  { %718 = vbcast.lane.b32.xlu0 %v715_v48, 256 }
 0x838   :  { %v612_v34 = vpop.xlane.xlu0 %611 }
 0x839   :  { %v614_v38 = vsub.f32 0.0, %v612_v34 }
 0x83b   :  { %v616_v39 = vsub.f32 %v614_v38, %v583_v19 }
 0x83c   :  { %v642_v51 = vpop.xlane.xlu0 %641 }
 0x83d   :  { %v644_v44 = vmul.f32 0.071428575, %v642_v51  ;;  %623 = vperm.xlu1 %840, %v616_v39  }
 0x83f   :  { %v646_v53 = vadd.f32 %v644_v44, %v583_v19 }
 0x841   :  { %653 = vperm.xlu0 %839, %v646_v53   ;;  %650 = vperm.xlu1 %840, %v645_v63  }
 0x898   :  { %v745_v54 = vpop.xlane.xlu0 %744 }
 0x899   :  { %v749_v58 = vsub.f32 0.0, %v745_v54 }
 0x89c   :  { %v748_v55 = vpop.xlane.xlu0 %747 }
 0x89d   :  { %v750_v3 = vsub.f32 0.0, %v748_v55 }
 0x8a0   :  { %v775_v9 = vpop.xlane.xlu0 %774 }
 0x8a1   :  { %v779_v11 = vmul.f32 0.071428575, %v775_v9 }
 0x8a4   :  { %v778_v2 = vpop.xlane.xlu0 %777 }
 0x8a5   :  { %v780_v22 = vmul.f32 0.071428575, %v778_v2 }
 0x8a8   :  { %v708_v56 = vpop.xlane.xlu0 %707 }
 0x8ac   :  { %v711_v4 = vpop.xlane.xlu0 %710 }
 0x8b0   :  { %v719_v57 = vpop.permute.xlu0 %718 }
 0x8b1   :  { %v722_v15 = vadd.f32 %v719_v57, %v711_v4  ;;  %v721_v37 = vadd.f32 %v719_v57, %v708_v56  ;;  %v752_v8 = vsub.f32 %v750_v3, %v719_v57  ;;  %v751_v10 = vsub.f32 %v749_v58, %v719_v57 }
 0x8b2   :  { %v782_v49 = vadd.f32 %v780_v22, %v719_v57  ;;  %v781_v50 = vadd.f32 %v779_v11, %v719_v57 }
 0x8b3   :  { %729 = vperm.xlu0 %839, %v722_v15   ;;  %726 = vperm.xlu1 %840, %v721_v37  }
 0x8b7   :  { %759 = vperm.xlu0 %839, %v752_v8   ;;  %756 = vperm.xlu1 %840, %v751_v10  }
 0x8bb   :  { %789 = vperm.xlu0 %839, %v782_v49   ;;  %786 = vperm.xlu1 %840, %v781_v50  }
 0x8bc   :  { %v624_v47 = vpop.permute.xlu1 %623 }
 0x8bd   :  { %v632_v19 = vrot.slane %v624_v47, %v984_v40 }
 0x8bf   :  { %v633_v59 = vsel %vm85_vm1, %v632_v19, %v628_v23 }
 0x8c0   :  { %819 = vst.msk [vmem:[%s1280_s5 + $0x14] sm:$0x3] %vm88_vm2, %v633_v59  ;;  %v654_v60 = vpop.permute.xlu0 %653  ;;  %v651_v61 = vpop.permute.xlu1 %650 }
 0x8c1   :  { %v662_v21 = vrot.slane %v654_v60, %v984_v40  ;;  %v658_v20 = vrot.slane %v651_v61, %v984_v40 }
 0x8c3   :  { %v663_v36 = vsel %vm85_vm1, %v662_v21, %v658_v20 }
 0x8c4   :  { %820 = vst.msk [vmem:[%s1280_s5 + $0x20] sm:$0x3] %vm88_vm2, %v663_v36 }
 0x932   :  { %v730_v14 = vpop.permute.xlu0 %729  ;;  %v727_v24 = vpop.permute.xlu1 %726 }
 0x933   :  { %v738_v7 = vrot.slane %v730_v14, %v984_v40  ;;  %v734_v17 = vrot.slane %v727_v24, %v984_v40 }
 0x935   :  { %v739_v32 = vsel %vm85_vm1, %v738_v7, %v734_v17 }
 0x936   :  { %821 = vst.msk [vmem:[%s1280_s5 + $0xa] sm:$0x3] %vm88_vm2, %v739_v32  ;;  %v760_v35 = vpop.permute.xlu0 %759  ;;  %v757_v52 = vpop.permute.xlu1 %756 }
 0x937   :  { %v768_v43 = vrot.slane %v760_v35, %v984_v40  ;;  %v764_v12 = vrot.slane %v757_v52, %v984_v40 }
 0x939   :  { %v769_v6 = vsel %vm85_vm1, %v768_v43, %v764_v12 }
 0x93a   :  { %822 = vst.msk [vmem:[%s1280_s5 + $0x16] sm:$0x3] %vm88_vm2, %v769_v6  ;;  %v790_v33 = vpop.permute.xlu0 %789  ;;  %v787_v25 = vpop.permute.xlu1 %786 }
 0x93b   :  { %v798_v45 = vrot.slane %v790_v33, %v984_v40  ;;  %v794_v41 = vrot.slane %v787_v25, %v984_v40 }
 0x93d   :  { %v799_v26 = vsel %vm85_vm1, %v798_v45, %v794_v41 }
 0x93e   :  { %823 = vst.msk [vmem:[%s1280_s5 + $0x22] sm:$0x3] %vm88_vm2, %v799_v26 }

</bundles_post_ra>
